<compile_context>
chip_gen: v7x
topology: tpu7x:2x2x1
jax: 0.10.0
libtpu: 0.0.40
codegen_flags: <defaults>
</compile_context>

<pallas_src>
import math

import jax
import jax.numpy as jnp
import numpy as np
from jax import lax
from jax.experimental import pallas as pl
from jax.experimental.pallas import tpu as pltpu  # noqa: F401  (TPU backend)

# ---- model hyper-parameters (small, consistent with the module) -------------
BATCH = 2
SEQ = 8
EMBED = 32
HEADS = 4
HEAD_DIM = EMBED // HEADS
FWD_EXPANSION = 4
HIDDEN = FWD_EXPANSION * EMBED
LN_EPS = 1e-5  # PyTorch nn.LayerNorm default


def _layernorm(x, gamma, beta):
    mu = jnp.mean(x, axis=-1, keepdims=True)
    var = jnp.mean((x - mu) ** 2, axis=-1, keepdims=True)
    return (x - mu) * lax.rsqrt(var + LN_EPS) * gamma + beta


def _gelu_tanh(x):
    # tanh-approximate GELU (== jax.nn.gelu(approximate=True)); only mul/add/tanh,
    # all guaranteed Mosaic lowerings.  |err| vs exact erf GELU < ~1e-3.
    c = jnp.float32(math.sqrt(2.0 / math.pi))
    return 0.5 * x * (1.0 + jnp.tanh(c * (x + 0.044715 * (x * x * x))))


# ----------------------------- Pallas kernel ---------------------------------
def transformer_block_kernel(
    qh_ref, kh_ref, vh_ref,     # (H*N, S, hd) head-major (leading index h*N+n)
    q_ref, mask_ref,            # (N, S, E), (N, S, S)
    wfc_ref, bfc_ref,           # attention output projection: (H, hd, E), (1, E)
    wg_ref, bg_ref,             # pH gate linear
    g1_ref, be1_ref,            # layernorm 1
    g2_ref, be2_ref,            # layernorm 2
    wf1_ref, bf1_ref,           # feed-forward linear 1
    wf2_ref, bf2_ref,           # feed-forward linear 2
    out_ref,                    # (N*S, E)
):
    scale = jnp.float32(1.0 / math.sqrt(HEAD_DIM))

    qh = qh_ref[...] * scale     # scale folded into q pre-MXU
    kh = kh_ref[...]
    vh = vh_ref[...]
    q = q_ref[...]               # (N, S, E) for residual + gate

    # ---- multi-head attention: heads already on the leading batch axis ----
    # energy[(h*N+n), i, j] = <q_h[n,i], k_h[n,j]> / sqrt(hd)
    energy = lax.dot_general(
        qh, kh, dimension_numbers=(((2,), (2,)), ((0,), (0,))),
        preferred_element_type=jnp.float32)                       # (H*N, S, S)

    # additive mask bias computed ONCE, broadcast (not replicated) over heads
    bias = jnp.where(mask_ref[...] == 0.0,
                     jnp.float32(-1e20), jnp.float32(0.0))        # (N, S, S)
    logits = energy.reshape(HEADS, BATCH, SEQ, SEQ) + bias[None]  # (H, N, S, S)

    m = jnp.max(logits, axis=-1, keepdims=True)
    e = jnp.exp(logits - m)
    attn = (e / jnp.sum(e, axis=-1, keepdims=True)
            ).reshape(HEADS * BATCH, SEQ, SEQ)                    # (H*N, S, S)

    oh = lax.dot_general(
        attn, vh, dimension_numbers=(((2,), (1,)), ((0,), (0,))),
        preferred_element_type=jnp.float32)                       # (H*N, S, hd)

    # fc_out folded into the head-blocked weight:
    #   sum_h  oh_h @ W_fc[h*hd:(h+1)*hd, :]  ==  concat(heads) @ W_fc
    oh3 = oh.reshape(HEADS, BATCH * SEQ, HEAD_DIM)                # (H, N*S, hd)
    proj = lax.dot_general(
        oh3, wfc_ref[...], dimension_numbers=(((2,), (1,)), ((0,), (0,))),
        preferred_element_type=jnp.float32)                       # (H, N*S, E)
    attn_out = jnp.sum(proj, axis=0) + bfc_ref[...]               # (N*S, E)

    # ---- pH gate: sigmoid(Linear(mean over sequence of the query)) ----
    x_avg = jnp.mean(q, axis=1)                                   # (N, E)
    z = jnp.dot(x_avg, wg_ref[...],
                preferred_element_type=jnp.float32) + bg_ref[...]
    gate = 1.0 / (1.0 + jnp.exp(-z))                              # (N, E)

    gated = gate[:, None, :] * attn_out.reshape(BATCH, SEQ, EMBED)  # (N, S, E)

    # ---- residual + layernorm 1 (dropout = identity) ----
    x1 = _layernorm((gated + q).reshape(BATCH * SEQ, EMBED),
                    g1_ref[...], be1_ref[...])                    # (N*S, E)

    # ---- feed-forward: Linear -> GELU(tanh) -> Linear ----
    h1 = jnp.dot(x1, wf1_ref[...],
                 preferred_element_type=jnp.float32) + bf1_ref[...]
    h1 = _gelu_tanh(h1)
    fo = jnp.dot(h1, wf2_ref[...],
                 preferred_element_type=jnp.float32) + bf2_ref[...]

    # ---- residual + layernorm 2 (dropout = identity) ----
    out2 = _layernorm(fo + x1, g2_ref[...], be2_ref[...])         # (N*S, E)
    out_ref[...] = out2.astype(out_ref.dtype)


# ----------------------------- wrapper ---------------------------------------
def transformer_block_phgate(value, key, query, mask, params):
    N, S, E = query.shape
    assert (N, S, E) == (BATCH, SEQ, EMBED)

    # Layout plumbing (zero FLOPs) done outside the kernel: split heads onto a
    # leading batch axis so the kernel never touches the lane axis for heads.
    def split_heads(x):  # (N, S, E) -> (H*N, S, hd), leading index = h*N + n
        return (x.reshape(N, S, HEADS, HEAD_DIM)
                 .transpose(2, 0, 1, 3)
                 .reshape(HEADS * N, S, HEAD_DIM))

    qh, kh, vh = split_heads(query), split_heads(key), split_heads(value)
    wfc3 = params["w_fc"].reshape(HEADS, HEAD_DIM, EMBED)  # head-blocked weight

    out2d = pl.pallas_call(
        transformer_block_kernel,
        out_shape=jax.ShapeDtypeStruct((N * S, E), jnp.float32),
    )(qh, kh, vh, query, mask,
      wfc3, params["b_fc"],
      params["w_gate"], params["b_gate"],
      params["g1"], params["be1"],
      params["g2"], params["be2"],
      params["w_ff1"], params["b_ff1"],
      params["w_ff2"], params["b_ff2"])

    return out2d.reshape(N, S, E)


# ----------------------------- pure-JAX reference ----------------------------
def reference(value, key, query, mask, p):
    N, S, E = query.shape

    def split_heads(x):
        return x.reshape(N, S, HEADS, HEAD_DIM).transpose(0, 2, 1, 3)

    qh, kh, vh = split_heads(query), split_heads(key), split_heads(value)
    energy = jnp.einsum("nhqd,nhkd->nhqk", qh, kh)
    energy = jnp.where(mask[:, None, :, :] == 0, -1e20, energy)
    attn = jax.nn.softmax(energy / math.sqrt(HEAD_DIM), axis=-1)
    out = jnp.einsum("nhqk,nhkd->nhqd", attn, vh)
    out = out.transpose(0, 2, 1, 3).reshape(N, S, E)
    attn_out = out @ p["w_fc"] + p["b_fc"]

    x_avg = query.mean(axis=1, keepdims=True)
    gate = jax.nn.sigmoid(x_avg @ p["w_gate"] + p["b_gate"])
    gated = gate * attn_out

    def ln(x, g, b):
        mu = x.mean(-1, keepdims=True)
        var = ((x - mu) ** 2).mean(-1, keepdims=True)
        return (x - mu) / jnp.sqrt(var + LN_EPS) * g + b

    x1 = ln(gated + query, p["g1"], p["be1"])
    h1 = jax.nn.gelu(x1 @ p["w_ff1"] + p["b_ff1"], approximate=False)
    fo = h1 @ p["w_ff2"] + p["b_ff2"]
    return ln(fo + x1, p["g2"], p["be2"])


# ----------------------------- main -------------------------------------------
if __name__ == "__main__":
    root = jax.random.PRNGKey(0)
    keys = jax.random.split(root, 12)

    def init(k, shape, scale=0.1):
        return (scale * jax.random.normal(k, shape)).astype(jnp.float32)

    # Deterministic synthetic parameters (shapes follow the module's __init__).
    # Weight matrices stored as (in_features, out_features); biases as (1, out).
    params = {
        "w_fc":  init(keys[0], (EMBED, EMBED)),
        "b_fc":  init(keys[1], (1, EMBED)),
        "w_gate": init(keys[2], (EMBED, EMBED)),
        "b_gate": init(keys[3], (1, EMBED)),
        "g1":  jnp.ones((1, EMBED), jnp.float32),
        "be1": jnp.zeros((1, EMBED), jnp.float32),
        "g2":  jnp.ones((1, EMBED), jnp.float32),
        "be2": jnp.zeros((1, EMBED), jnp.float32),
        "w_ff1": init(keys[4], (EMBED, HIDDEN)),
        "b_ff1": init(keys[5], (1, HIDDEN)),
        "w_ff2": init(keys[6], (HIDDEN, EMBED)),
        "b_ff2": init(keys[7], (1, EMBED)),
    }

    value = init(keys[8], (BATCH, SEQ, EMBED), scale=1.0)
    key_t = init(keys[9], (BATCH, SEQ, EMBED), scale=1.0)
    query = init(keys[10], (BATCH, SEQ, EMBED), scale=1.0)
    # Causal mask shared by all heads (1 = keep, 0 = masked with -1e20).
    mask = jnp.broadcast_to(
        jnp.tril(jnp.ones((SEQ, SEQ), jnp.float32)), (BATCH, SEQ, SEQ)
    )

    fwd = jax.jit(transformer_block_phgate)
    out = jax.block_until_ready(fwd(value, key_t, query, mask, params))

    ref = jax.block_until_ready(reference(value, key_t, query, mask, params))
    np.testing.assert_allclose(np.asarray(out), np.asarray(ref),
                               rtol=1e-2, atol=1e-2)

    print("KERNEL_OK")
</pallas_src>

<mosaic_0001>
module attributes {stable_mosaic.version = 11 : i64} {
  func.func @transformer_block_kernel(%arg0: memref<8x8x8xf32, #tpu.memory_space<vmem>>, %arg1: memref<8x8x8xf32, #tpu.memory_space<vmem>>, %arg2: memref<8x8x8xf32, #tpu.memory_space<vmem>>, %arg3: memref<2x8x32xf32, #tpu.memory_space<vmem>>, %arg4: memref<2x8x8xf32, #tpu.memory_space<vmem>>, %arg5: memref<4x8x32xf32, #tpu.memory_space<vmem>>, %arg6: memref<1x32xf32, #tpu.memory_space<vmem>>, %arg7: memref<32x32xf32, #tpu.memory_space<vmem>>, %arg8: memref<1x32xf32, #tpu.memory_space<vmem>>, %arg9: memref<1x32xf32, #tpu.memory_space<vmem>>, %arg10: memref<1x32xf32, #tpu.memory_space<vmem>>, %arg11: memref<1x32xf32, #tpu.memory_space<vmem>>, %arg12: memref<1x32xf32, #tpu.memory_space<vmem>>, %arg13: memref<32x128xf32, #tpu.memory_space<vmem>>, %arg14: memref<1x128xf32, #tpu.memory_space<vmem>>, %arg15: memref<128x32xf32, #tpu.memory_space<vmem>>, %arg16: memref<1x32xf32, #tpu.memory_space<vmem>>, %arg17: memref<16x32xf32, #tpu.memory_space<vmem>>) attributes {dimension_semantics = [], scalar_prefetch = 0 : i64, scratch_operands = 0 : i64, tpu.core_type = #tpu.core_type<tc>} {
    %c0 = arith.constant 0 : index
    %c0_0 = arith.constant 0 : index
    %c0_1 = arith.constant 0 : index
    %0 = vector.load %arg0[%c0, %c0_0, %c0_1] : memref<8x8x8xf32, #tpu.memory_space<vmem>>, vector<8x8x8xf32>
    %cst = arith.constant 0.353553385 : f32
    %1 = vector.broadcast %cst : f32 to vector<8x8x8xf32>
    %2 = arith.mulf %0, %1 : vector<8x8x8xf32>
    %c0_2 = arith.constant 0 : index
    %c0_3 = arith.constant 0 : index
    %c0_4 = arith.constant 0 : index
    %3 = vector.load %arg1[%c0_2, %c0_3, %c0_4] : memref<8x8x8xf32, #tpu.memory_space<vmem>>, vector<8x8x8xf32>
    %c0_5 = arith.constant 0 : index
    %c0_6 = arith.constant 0 : index
    %c0_7 = arith.constant 0 : index
    %4 = vector.load %arg2[%c0_5, %c0_6, %c0_7] : memref<8x8x8xf32, #tpu.memory_space<vmem>>, vector<8x8x8xf32>
    %c0_8 = arith.constant 0 : index
    %c0_9 = arith.constant 0 : index
    %c0_10 = arith.constant 0 : index
    %5 = vector.load %arg3[%c0_8, %c0_9, %c0_10] : memref<2x8x32xf32, #tpu.memory_space<vmem>>, vector<2x8x32xf32>
    %cst_11 = arith.constant dense<0.000000e+00> : vector<8x8x8xf32>
    %6 = tpu.matmul %2, %3, %cst_11 {dimension_numbers = #tpu.dot_dimension_numbers<[2], [2], [1], [1], [0, 0, 0, 1, 1, 1], [0], [0]>} : vector<8x8x8xf32>, vector<8x8x8xf32>, vector<8x8x8xf32> -> vector<8x8x8xf32>
    %c0_12 = arith.constant 0 : index
    %c0_13 = arith.constant 0 : index
    %c0_14 = arith.constant 0 : index
    %7 = vector.load %arg4[%c0_12, %c0_13, %c0_14] : memref<2x8x8xf32, #tpu.memory_space<vmem>>, vector<2x8x8xf32>
    %cst_15 = arith.constant 0.000000e+00 : f32
    %8 = vector.broadcast %cst_15 : f32 to vector<2x8x8xf32>
    %9 = arith.cmpf oeq, %7, %8 : vector<2x8x8xf32>
    %cst_16 = arith.constant -1.000000e+20 : f32
    %cst_17 = arith.constant 0.000000e+00 : f32
    %10 = vector.broadcast %cst_16 : f32 to vector<2x8x8xf32>
    %11 = vector.broadcast %cst_17 : f32 to vector<2x8x8xf32>
    %12 = arith.select %9, %10, %11 : vector<2x8x8xi1>, vector<2x8x8xf32>
    %13 = vector.shape_cast %6 : vector<8x8x8xf32> to vector<4x2x8x8xf32>
    %14 = vector.shape_cast %12 : vector<2x8x8xf32> to vector<1x2x8x8xf32>
    %15 = vector.broadcast %14 : vector<1x2x8x8xf32> to vector<4x2x8x8xf32>
    %16 = arith.addf %13, %15 : vector<4x2x8x8xf32>
    %cst_18 = arith.constant dense<0xFF800000> : vector<4x2x8xf32>
    %17 = vector.multi_reduction <maximumf>, %16, %cst_18 [3] : vector<4x2x8x8xf32> to vector<4x2x8xf32>
    %18 = vector.shape_cast %17 : vector<4x2x8xf32> to vector<4x2x8x1xf32>
    %19 = vector.broadcast %18 : vector<4x2x8x1xf32> to vector<4x2x8x8xf32>
    %20 = arith.subf %16, %19 : vector<4x2x8x8xf32>
    %21 = math.exp %20 : vector<4x2x8x8xf32>
    %cst_19 = arith.constant dense<0.000000e+00> : vector<4x2x8xf32>
    %22 = vector.multi_reduction <add>, %21, %cst_19 [3] : vector<4x2x8x8xf32> to vector<4x2x8xf32>
    %23 = vector.shape_cast %22 : vector<4x2x8xf32> to vector<4x2x8x1xf32>
    %24 = vector.broadcast %23 : vector<4x2x8x1xf32> to vector<4x2x8x8xf32>
    %25 = arith.divf %21, %24 : vector<4x2x8x8xf32>
    %26 = vector.shape_cast %25 : vector<4x2x8x8xf32> to vector<8x8x8xf32>
    %cst_20 = arith.constant dense<0.000000e+00> : vector<8x8x8xf32>
    %27 = tpu.matmul %26, %4, %cst_20 {dimension_numbers = #tpu.dot_dimension_numbers<[2], [1], [1], [2], [0, 0, 0, 1, 1, 2], [0], [0]>} : vector<8x8x8xf32>, vector<8x8x8xf32>, vector<8x8x8xf32> -> vector<8x8x8xf32>
    %28 = vector.shape_cast %27 : vector<8x8x8xf32> to vector<4x16x8xf32>
    %c0_21 = arith.constant 0 : index
    %c0_22 = arith.constant 0 : index
    %c0_23 = arith.constant 0 : index
    %29 = vector.load %arg5[%c0_21, %c0_22, %c0_23] : memref<4x8x32xf32, #tpu.memory_space<vmem>>, vector<4x8x32xf32>
    %cst_24 = arith.constant dense<0.000000e+00> : vector<4x16x32xf32>
    %30 = tpu.matmul %28, %29, %cst_24 {dimension_numbers = #tpu.dot_dimension_numbers<[2], [1], [1], [2], [0, 0, 0, 1, 1, 2], [0], [0]>} : vector<4x16x8xf32>, vector<4x8x32xf32>, vector<4x16x32xf32> -> vector<4x16x32xf32>
    %cst_25 = arith.constant dense<0.000000e+00> : vector<16x32xf32>
    %31 = vector.multi_reduction <add>, %30, %cst_25 [0] : vector<4x16x32xf32> to vector<16x32xf32>
    %c0_26 = arith.constant 0 : index
    %c0_27 = arith.constant 0 : index
    %32 = vector.load %arg6[%c0_26, %c0_27] : memref<1x32xf32, #tpu.memory_space<vmem>>, vector<1x32xf32>
    %33 = vector.broadcast %32 : vector<1x32xf32> to vector<16x32xf32>
    %34 = arith.addf %31, %33 : vector<16x32xf32>
    %cst_28 = arith.constant dense<0.000000e+00> : vector<2x32xf32>
    %35 = vector.multi_reduction <add>, %5, %cst_28 [1] : vector<2x8x32xf32> to vector<2x32xf32>
    %cst_29 = arith.constant 8.000000e+00 : f32
    %36 = vector.broadcast %cst_29 : f32 to vector<2x32xf32>
    %37 = arith.divf %35, %36 : vector<2x32xf32>
    %c0_30 = arith.constant 0 : index
    %c0_31 = arith.constant 0 : index
    %38 = vector.load %arg7[%c0_30, %c0_31] : memref<32x32xf32, #tpu.memory_space<vmem>>, vector<32x32xf32>
    %cst_32 = arith.constant dense<0.000000e+00> : vector<2x32xf32>
    %39 = tpu.matmul %37, %38, %cst_32 {dimension_numbers = #tpu.dot_dimension_numbers<[1], [0], [0], [1], [0, 0, 1, 1], [], []>} : vector<2x32xf32>, vector<32x32xf32>, vector<2x32xf32> -> vector<2x32xf32>
    %c0_33 = arith.constant 0 : index
    %c0_34 = arith.constant 0 : index
    %40 = vector.load %arg8[%c0_33, %c0_34] : memref<1x32xf32, #tpu.memory_space<vmem>>, vector<1x32xf32>
    %41 = vector.broadcast %40 : vector<1x32xf32> to vector<2x32xf32>
    %42 = arith.addf %39, %41 : vector<2x32xf32>
    %cst_35 = arith.constant 0.000000e+00 : f32
    %43 = vector.broadcast %cst_35 : f32 to vector<2x32xf32>
    %44 = arith.subf %43, %42 : vector<2x32xf32>
    %45 = math.exp %44 : vector<2x32xf32>
    %cst_36 = arith.constant 1.000000e+00 : f32
    %46 = vector.broadcast %cst_36 : f32 to vector<2x32xf32>
    %47 = arith.addf %46, %45 : vector<2x32xf32>
    %cst_37 = arith.constant 1.000000e+00 : f32
    %48 = vector.broadcast %cst_37 : f32 to vector<2x32xf32>
    %49 = arith.divf %48, %47 : vector<2x32xf32>
    %50 = vector.shape_cast %49 : vector<2x32xf32> to vector<2x1x32xf32>
    %51 = vector.shape_cast %34 : vector<16x32xf32> to vector<2x8x32xf32>
    %52 = vector.broadcast %50 : vector<2x1x32xf32> to vector<2x8x32xf32>
    %53 = arith.mulf %52, %51 : vector<2x8x32xf32>
    %54 = arith.addf %53, %5 : vector<2x8x32xf32>
    %55 = vector.shape_cast %54 : vector<2x8x32xf32> to vector<16x32xf32>
    %c0_38 = arith.constant 0 : index
    %c0_39 = arith.constant 0 : index
    %56 = vector.load %arg9[%c0_38, %c0_39] : memref<1x32xf32, #tpu.memory_space<vmem>>, vector<1x32xf32>
    %c0_40 = arith.constant 0 : index
    %c0_41 = arith.constant 0 : index
    %57 = vector.load %arg10[%c0_40, %c0_41] : memref<1x32xf32, #tpu.memory_space<vmem>>, vector<1x32xf32>
    %cst_42 = arith.constant dense<0.000000e+00> : vector<16xf32>
    %58 = vector.multi_reduction <add>, %55, %cst_42 [1] : vector<16x32xf32> to vector<16xf32>
    %59 = vector.shape_cast %58 : vector<16xf32> to vector<16x1xf32>
    %cst_43 = arith.constant 3.200000e+01 : f32
    %60 = vector.broadcast %cst_43 : f32 to vector<16x1xf32>
    %61 = arith.divf %59, %60 : vector<16x1xf32>
    %62 = vector.broadcast %61 : vector<16x1xf32> to vector<16x32xf32>
    %63 = arith.subf %55, %62 : vector<16x32xf32>
    %64 = arith.mulf %63, %63 : vector<16x32xf32>
    %cst_44 = arith.constant dense<0.000000e+00> : vector<16xf32>
    %65 = vector.multi_reduction <add>, %64, %cst_44 [1] : vector<16x32xf32> to vector<16xf32>
    %66 = vector.shape_cast %65 : vector<16xf32> to vector<16x1xf32>
    %cst_45 = arith.constant 3.200000e+01 : f32
    %67 = vector.broadcast %cst_45 : f32 to vector<16x1xf32>
    %68 = arith.divf %66, %67 : vector<16x1xf32>
    %69 = vector.broadcast %61 : vector<16x1xf32> to vector<16x32xf32>
    %70 = arith.subf %55, %69 : vector<16x32xf32>
    %cst_46 = arith.constant 9.99999974E-6 : f32
    %71 = vector.broadcast %cst_46 : f32 to vector<16x1xf32>
    %72 = arith.addf %68, %71 : vector<16x1xf32>
    %73 = math.rsqrt %72 : vector<16x1xf32>
    %74 = vector.broadcast %73 : vector<16x1xf32> to vector<16x32xf32>
    %75 = arith.mulf %70, %74 : vector<16x32xf32>
    %76 = vector.broadcast %56 : vector<1x32xf32> to vector<16x32xf32>
    %77 = arith.mulf %75, %76 : vector<16x32xf32>
    %78 = vector.broadcast %57 : vector<1x32xf32> to vector<16x32xf32>
    %79 = arith.addf %77, %78 : vector<16x32xf32>
    %c0_47 = arith.constant 0 : index
    %c0_48 = arith.constant 0 : index
    %80 = vector.load %arg13[%c0_47, %c0_48] : memref<32x128xf32, #tpu.memory_space<vmem>>, vector<32x128xf32>
    %cst_49 = arith.constant dense<0.000000e+00> : vector<16x128xf32>
    %81 = tpu.matmul %79, %80, %cst_49 {dimension_numbers = #tpu.dot_dimension_numbers<[1], [0], [0], [1], [0, 0, 1, 1], [], []>} : vector<16x32xf32>, vector<32x128xf32>, vector<16x128xf32> -> vector<16x128xf32>
    %c0_50 = arith.constant 0 : index
    %c0_51 = arith.constant 0 : index
    %82 = vector.load %arg14[%c0_50, %c0_51] : memref<1x128xf32, #tpu.memory_space<vmem>>, vector<1x128xf32>
    %83 = vector.broadcast %82 : vector<1x128xf32> to vector<16x128xf32>
    %84 = arith.addf %81, %83 : vector<16x128xf32>
    %cst_52 = arith.constant 5.000000e-01 : f32
    %85 = vector.broadcast %cst_52 : f32 to vector<16x128xf32>
    %86 = arith.mulf %85, %84 : vector<16x128xf32>
    %87 = arith.mulf %84, %84 : vector<16x128xf32>
    %88 = arith.mulf %87, %84 : vector<16x128xf32>
    %cst_53 = arith.constant 4.471500e-02 : f32
    %89 = vector.broadcast %cst_53 : f32 to vector<16x128xf32>
    %90 = arith.mulf %89, %88 : vector<16x128xf32>
    %91 = arith.addf %84, %90 : vector<16x128xf32>
    %cst_54 = arith.constant 0.797884583 : f32
    %92 = vector.broadcast %cst_54 : f32 to vector<16x128xf32>
    %93 = arith.mulf %92, %91 : vector<16x128xf32>
    %94 = math.tanh %93 : vector<16x128xf32>
    %cst_55 = arith.constant 1.000000e+00 : f32
    %95 = vector.broadcast %cst_55 : f32 to vector<16x128xf32>
    %96 = arith.addf %95, %94 : vector<16x128xf32>
    %97 = arith.mulf %86, %96 : vector<16x128xf32>
    %c0_56 = arith.constant 0 : index
    %c0_57 = arith.constant 0 : index
    %98 = vector.load %arg15[%c0_56, %c0_57] : memref<128x32xf32, #tpu.memory_space<vmem>>, vector<128x32xf32>
    %cst_58 = arith.constant dense<0.000000e+00> : vector<16x32xf32>
    %99 = tpu.matmul %97, %98, %cst_58 {dimension_numbers = #tpu.dot_dimension_numbers<[1], [0], [0], [1], [0, 0, 1, 1], [], []>} : vector<16x128xf32>, vector<128x32xf32>, vector<16x32xf32> -> vector<16x32xf32>
    %c0_59 = arith.constant 0 : index
    %c0_60 = arith.constant 0 : index
    %100 = vector.load %arg16[%c0_59, %c0_60] : memref<1x32xf32, #tpu.memory_space<vmem>>, vector<1x32xf32>
    %101 = vector.broadcast %100 : vector<1x32xf32> to vector<16x32xf32>
    %102 = arith.addf %99, %101 : vector<16x32xf32>
    %103 = arith.addf %102, %79 : vector<16x32xf32>
    %c0_61 = arith.constant 0 : index
    %c0_62 = arith.constant 0 : index
    %104 = vector.load %arg11[%c0_61, %c0_62] : memref<1x32xf32, #tpu.memory_space<vmem>>, vector<1x32xf32>
    %c0_63 = arith.constant 0 : index
    %c0_64 = arith.constant 0 : index
    %105 = vector.load %arg12[%c0_63, %c0_64] : memref<1x32xf32, #tpu.memory_space<vmem>>, vector<1x32xf32>
    %cst_65 = arith.constant dense<0.000000e+00> : vector<16xf32>
    %106 = vector.multi_reduction <add>, %103, %cst_65 [1] : vector<16x32xf32> to vector<16xf32>
    %107 = vector.shape_cast %106 : vector<16xf32> to vector<16x1xf32>
    %cst_66 = arith.constant 3.200000e+01 : f32
    %108 = vector.broadcast %cst_66 : f32 to vector<16x1xf32>
    %109 = arith.divf %107, %108 : vector<16x1xf32>
    %110 = vector.broadcast %109 : vector<16x1xf32> to vector<16x32xf32>
    %111 = arith.subf %103, %110 : vector<16x32xf32>
    %112 = arith.mulf %111, %111 : vector<16x32xf32>
    %cst_67 = arith.constant dense<0.000000e+00> : vector<16xf32>
    %113 = vector.multi_reduction <add>, %112, %cst_67 [1] : vector<16x32xf32> to vector<16xf32>
    %114 = vector.shape_cast %113 : vector<16xf32> to vector<16x1xf32>
    %cst_68 = arith.constant 3.200000e+01 : f32
    %115 = vector.broadcast %cst_68 : f32 to vector<16x1xf32>
    %116 = arith.divf %114, %115 : vector<16x1xf32>
    %117 = vector.broadcast %109 : vector<16x1xf32> to vector<16x32xf32>
    %118 = arith.subf %103, %117 : vector<16x32xf32>
    %cst_69 = arith.constant 9.99999974E-6 : f32
    %119 = vector.broadcast %cst_69 : f32 to vector<16x1xf32>
    %120 = arith.addf %116, %119 : vector<16x1xf32>
    %121 = math.rsqrt %120 : vector<16x1xf32>
    %122 = vector.broadcast %121 : vector<16x1xf32> to vector<16x32xf32>
    %123 = arith.mulf %118, %122 : vector<16x32xf32>
    %124 = vector.broadcast %104 : vector<1x32xf32> to vector<16x32xf32>
    %125 = arith.mulf %123, %124 : vector<16x32xf32>
    %126 = vector.broadcast %105 : vector<1x32xf32> to vector<16x32xf32>
    %127 = arith.addf %125, %126 : vector<16x32xf32>
    %c0_70 = arith.constant 0 : index
    %c0_71 = arith.constant 0 : index
    %128 = vector.load %arg17[%c0_70, %c0_71] : memref<16x32xf32, #tpu.memory_space<vmem>>, vector<16x32xf32>
    tpu.vector_store %arg17[%c0_70, %c0_71], %127 {strides = array<i32>} : memref<16x32xf32, #tpu.memory_space<vmem>>, vector<16x32xf32>,
    return
  }
}

</mosaic_0001>

<bundles_post_ra>
// kernel: transformer_block_phgate.1
= control target key start
LH: loop header
LB: loop body
LE: loop exit
PB: predicated region body
PF: predicated region fallthrough
CT: control target
= control target key end

     0   :  { %s3052_s0 = inlined_call_operand.vmem [shape: f32[8,8,8], index: 0, kind: input, shape index: {}]   ;;  %s3053_s1 = inlined_call_operand.vmem [shape: f32[8,8,8], index: 1, kind: input, shape index: {}]   ;;  %s3054_s2 = inlined_call_operand.vmem [shape: f32[8,8,8], index: 2, kind: input, shape index: {}]   ;;  %s3055_s3 = inlined_call_operand.vmem [shape: f32[2,8,32], index: 3, kind: input, shape index: {}]   ;;  %s3056_s4 = inlined_call_operand.vmem [shape: f32[2,8,8], index: 4, kind: input, shape index: {}]   ;;  %s3057_s5 = inlined_call_operand.vmem [shape: f32[4,8,32], index: 5, kind: input, shape index: {}]   ;;  %s3058_s6 = inlined_call_operand.vmem [shape: f32[1,32], index: 6, kind: input, shape index: {}]   ;;  %s3059_s7 = inlined_call_operand.vmem [shape: f32[32,32], index: 7, kind: input, shape index: {}]   ;;  %s3060_s8 = inlined_call_operand.vmem [shape: f32[1,32], index: 8, kind: input, shape index: {}]   ;;  %s3061_s9 = inlined_call_operand.vmem [shape: f32[1,32], index: 9, kind: input, shape index: {}]   ;;  %s3062_s10 = inlined_call_operand.vmem [shape: f32[1,32], index: 10, kind: input, shape index: {}]   ;;  %s3063_s11 = inlined_call_operand.vmem [shape: f32[1,32], index: 11, kind: input, shape index: {}]   ;;  %s3064_s12 = inlined_call_operand.vmem [shape: f32[1,32], index: 12, kind: input, shape index: {}]   ;;  %s3065_s13 = inlined_call_operand.vmem [shape: f32[32,128], index: 13, kind: input, shape index: {}]   ;;  %s3066_s14 = inlined_call_operand.vmem [shape: f32[1,128], index: 14, kind: input, shape index: {}]   ;;  %s3067_s15 = inlined_call_operand.vmem [shape: f32[128,32], index: 15, kind: input, shape index: {}]   ;;  %s3068_s16 = inlined_call_operand.vmem [shape: f32[1,32], index: 16, kind: input, shape index: {}]   ;;  %s3069_s17 = inlined_call_operand.hbm [shape: f32[16,32], index: 17, kind: output, shape index: {}]  }
   0x1   :  { %3072 = sst [smem:[#allocation5_spill]] %s3052_s0 }
   0x2   :  { %3073 = sst [smem:[#allocation6_spill]] %s3053_s1 }
   0x3   :  { %s3074_s26 = sld [smem:[#allocation6_spill]]  ;;  %vm91_vm0 = vcmask 64512   ;;  %s3075_s29 = sld [smem:[#allocation5_spill]]  ;;  %v2600_v2 = vmov 0.0   ;;  %vm2601_vm1 = vmmov 0  }
   0x4   :  { %2318 = vmatprep.subr.mxu1 %v2600_v2  ;;  %2320 = vmatprep.mubr.msk.f32.mxu1 %vm2601_vm1, %v2600_v2 }
   0x5   :  { %2338 = vmatprep.subr.mxu0 %v2600_v2  ;;  %2340 = vmatprep.mubr.msk.f32.mxu0 %vm2601_vm1, %v2600_v2 }
   0x9   :  { %v73_v0 = vld [vmem:[%s3074_s26] sm:$0xff]  ;;  %v58_v5 = vld [vmem:[%s3075_s29 + $0x8] sm:$0xff]  ;;  %v63_v9 = vld [vmem:[%s3075_s29 + $0x30] sm:$0xff] }
   0xa   :  { %v57_v1 = vld [vmem:[%s3075_s29] sm:$0xff]  ;;  %2319 = vmatpush3.xpose.msk.msra.mxu1 %vm91_vm0, %v73_v0  ;;  %v74_v7 = vld [vmem:[%s3074_s26 + $0x8] sm:$0xff]  ;;  %v66_v10 = vmul.f32 0.35355338, %v58_v5  ;;  %v79_v11 = vld [vmem:[%s3074_s26 + $0x30] sm:$0xff] }
   0xb   :  { %v65_v3 = vmul.f32 0.35355338, %v57_v1  ;;  %v77_v4 = vld [vmem:[%s3074_s26 + $0x20] sm:$0xff]  ;;  %2323 = vmatprep.subr.mxu1 %v2600_v2  ;;  %v59_v12 = vld [vmem:[%s3075_s29 + $0x10] sm:$0xff] }
   0xc   :  { %v61_v6 = vld [vmem:[%s3075_s29 + $0x20] sm:$0xff]  ;;  %2339 = vmatpush3.xpose.msk.msra.mxu0 %vm91_vm0, %v77_v4 }
   0xd   :  { %v69_v8 = vmul.f32 0.35355338, %v61_v6  ;;  %2348 = vmatprep.subr.mxu0 %v2600_v2  ;;  %2321 = vmatmul.mubr.msk.f32.vlgmr.msra.gmra.mrb[0].mxu1 %vm91_vm0, %v65_v3 }
   0xe   :  { %2324 = vmatpush3.xpose.msk.msra.mxu1 %vm91_vm0, %v74_v7  ;;  %2325 = vmatprep.mubr.msk.f32.mxu1 %vm2601_vm1, %v2600_v2 }
   0xf   :  { %22 = vsyncpa [#allocation3], 0  ;;  %2328 = vmatprep.subr.mxu1 %v2600_v2  ;;  %v75_v13 = vld [vmem:[%s3074_s26 + $0x10] sm:$0xff]  ;;  %2341 = vmatmul.mubr.msk.f32.vlgmr.msra.gmra.mrb[0].mxu0 %vm91_vm0, %v69_v8  ;;  %v71_v14 = vmul.f32 0.35355338, %v63_v9  ;;  %v60_v16 = vld [vmem:[%s3075_s29 + $0x18] sm:$0xff] }
  0x10   :  { %2349 = vmatpush3.xpose.msk.msra.mxu0 %vm91_vm0, %v79_v11  ;;  %2350 = vmatprep.mubr.msk.f32.mxu0 %vm2601_vm1, %v2600_v2  ;;  %v67_v15 = vmul.f32 0.35355338, %v59_v12  ;;  %v76_v17 = vld [vmem:[%s3074_s26 + $0x18] sm:$0xff]  ;;  %v68_v18 = vmul.f32 0.35355338, %v60_v16  ;;  %v62_v19 = vld [vmem:[%s3075_s29 + $0x28] sm:$0xff] }
  0x11   :  { %2326 = vmatmul.mubr.msk.f32.vlgmr.msra.gmra.mrb[2].mxu1 %vm91_vm0, %v66_v10  ;;  %2358 = vmatprep.subr.mxu0 %v2600_v2  ;;  %v78_v20 = vld [vmem:[%s3074_s26 + $0x28] sm:$0xff]  ;;  %v70_v21 = vmul.f32 0.35355338, %v62_v19  ;;  %v64_v22 = vld [vmem:[%s3075_s29 + $0x38] sm:$0xff]  ;;  %v700_v25 = vld [vmem:[%s3056_s4] sm:$0xff]  ;;  %vm1714_vm4 = vcmask 261120  }
  0x12   :  { %2329 = vmatpush3.xpose.msk.msra.mxu1 %vm91_vm0, %v75_v13  ;;  %2330 = vmatprep.mubr.msk.f32.mxu1 %vm2601_vm1, %v2600_v2  ;;  %v80_v23 = vld [vmem:[%s3074_s26 + $0x38] sm:$0xff]  ;;  %v72_v24 = vmul.f32 0.35355338, %v64_v22  ;;  %vm702_vm2 = vcmp.eq.f32.partialorder %v700_v25, 0.0  ;;  %v701_v26 = vld [vmem:[%s3056_s4 + $0x8] sm:$0xff]  ;;  %vm1768_vm5 = vcmask 1041409  }
  0x13   :  { %2333 = vmatprep.subr.mxu1 %v2600_v2  ;;  %2351 = vmatmul.mubr.msk.f32.vlgmr.msra.gmra.mrb[2].mxu0 %vm91_vm0, %v71_v14  ;;  %v704_v27 = vsel %vm702_vm2, -1e+20, %v2600_v2  ;;  %vm703_vm3 = vcmp.eq.f32.partialorder %v701_v26, 0.0 }
  0x14   :  { %2360 = vmatprep.mubr.msk.f32.mxu0 %vm2601_vm1, %v2600_v2  ;;  %v705_v31 = vsel %vm703_vm3, -1e+20, %v2600_v2 }
  0x15   :  { %2331 = vmatmul.mubr.msk.f32.vlgmr.msra.gmra.mrb[4].mxu1 %vm91_vm0, %v67_v15 }
  0x16   :  { %2334 = vmatpush3.xpose.msk.msra.mxu1 %vm91_vm0, %v76_v17  ;;  %2335 = vmatprep.mubr.msk.f32.mxu1 %vm2601_vm1, %v2600_v2 }
  0x17   :  { %2343 = vmatprep.subr.mxu1 %v2600_v2 }
  0x19   :  { %2336 = vmatmul.mubr.msk.f32.vlgmr.msra.gmra.mrb[6].mxu1 %vm91_vm0, %v68_v18 }
  0x1a   :  { %2344 = vmatpush3.xpose.msk.msra.mxu1 %vm91_vm0, %v78_v20  ;;  %2345 = vmatprep.mubr.msk.f32.mxu1 %vm2601_vm1, %v2600_v2 }
  0x1b   :  { %2353 = vmatprep.subr.mxu1 %v2600_v2 }
  0x1d   :  { %2346 = vmatmul.mubr.msk.f32.vlgmr.msra.gmra.mrb[8].mxu1 %vm91_vm0, %v70_v21 }
  0x1e   :  { %2354 = vmatpush3.xpose.msk.msra.mxu1 %vm91_vm0, %v80_v23  ;;  %2355 = vmatprep.mubr.msk.f32.mxu1 %vm2601_vm1, %v2600_v2 }
  0x1f   :  { %2363 = vmatprep.subr.mxu1 %v2600_v2 }
  0x21   :  { %2356 = vmatmul.mubr.msk.f32.vlgmr.msra.gmra.mrb[10].mxu1 %vm91_vm0, %v72_v24 }
  0x22   :  { %2365 = vmatprep.mubr.msk.f32.mxu1 %vm2601_vm1, %v2600_v2 }
  0xe0   :  { %v164_v28 = vpop.f32.mrb[0].mxu1 }
  0xe1   :  { %v706_v29 = vadd.f32 %v704_v27, %v164_v28  ;;  %v2322_v30 = vpop.f32.mrb[1].mxu1 }
  0xe2   :  { %v468_v32 = vpop.f32.mrb[0].mxu0 }
  0xe3   :  { %v714_v33 = vsel %vm91_vm0, %v706_v29, -inf  ;;  %v2342_v34 = vpop.f32.mrb[1].mxu0  ;;  %v710_v38 = vadd.f32 %v704_v27, %v468_v32 }
  0xe4   :  { %715 = vmax.xlane.f32.xlu0 %v714_v33  ;;  %v240_v35 = vpop.f32.mrb[2].mxu1 }
  0xe5   :  { %v707_v36 = vadd.f32 %v705_v31, %v240_v35  ;;  %v2327_v37 = vpop.f32.mrb[3].mxu1  ;;  %v726_v46 = vsel %vm91_vm0, %v710_v38, -inf }
  0xe6   :  { %v620_v39 = vpop.f32.mrb[2].mxu0 }
  0xe7   :  { %v717_v40 = vsel %vm91_vm0, %v707_v36, -inf  ;;  %v2352_v41 = vpop.f32.mrb[3].mxu0  ;;  %v712_v45 = vadd.f32 %v704_v27, %v620_v39  ;;  %v82_v39 = vld [vmem:[%s3054_s2 + $0x8] sm:$0xff] }
  0xe8   :  { %718 = vmax.xlane.f32.xlu0 %v717_v40  ;;  %v316_v42 = vpop.f32.mrb[4].mxu1  ;;  %2364 = vmatpush3.msra.mxu1 %v82_v39 }
  0xe9   :  { %v708_v43 = vadd.f32 %v704_v27, %v316_v42  ;;  %v2332_v44 = vpop.f32.mrb[5].mxu1  ;;  %v732_v51 = vsel %vm91_vm0, %v712_v45, -inf  ;;  %2373 = vmatprep.subr.mxu1 %v2600_v2 }
  0xeb   :  { %v720_v47 = vsel %vm91_vm0, %v708_v43, -inf }
  0xec   :  { %727 = vmax.xlane.f32.xlu0 %v726_v46  ;;  %721 = vmax.xlane.f32.xlu1 %v720_v47  ;;  %v392_v48 = vpop.f32.mrb[6].mxu1 }
  0xed   :  { %v709_v49 = vadd.f32 %v705_v31, %v392_v48  ;;  %v2337_v50 = vpop.f32.mrb[7].mxu1 }
  0xee   :  { %v84_v50 = vld [vmem:[%s3054_s2 + $0x18] sm:$0xff] }
  0xef   :  { %v723_v52 = vsel %vm91_vm0, %v709_v49, -inf }
  0xf0   :  { %733 = vmax.xlane.f32.xlu0 %v732_v51  ;;  %724 = vmax.xlane.f32.xlu1 %v723_v52  ;;  %v544_v53 = vpop.f32.mrb[8].mxu1 }
  0xf1   :  { %v711_v54 = vadd.f32 %v705_v31, %v544_v53  ;;  %v2347_v55 = vpop.f32.mrb[9].mxu1 }
  0xf3   :  { %v729_v56 = vsel %vm91_vm0, %v711_v54, -inf }
  0xf4   :  { %730 = vmax.xlane.f32.xlu1 %v729_v56  ;;  %v696_v57 = vpop.f32.mrb[10].mxu1  ;;  %v85_v56 = vld [vmem:[%s3054_s2 + $0x20] sm:$0xff] }
  0xf5   :  { %v713_v58 = vadd.f32 %v705_v31, %v696_v57  ;;  %v2357_v59 = vpop.f32.mrb[11].mxu1 }
  0xf7   :  { %v735_v60 = vsel %vm91_vm0, %v713_v58, -inf }
  0xf8   :  { %736 = vmax.xlane.f32.xlu1 %v735_v60  ;;  %v87_v60 = vld [vmem:[%s3054_s2 + $0x30] sm:$0xff] }
 0x171   :  { %v716_v61 = vpop.xlane.xlu0 %715 }
 0x172   :  { %v738_v62 = vsub.f32 %v706_v29, %v716_v61 }
 0x174   :  { %v746_v63 = vmul.f32 1.442695, %v738_v62  ;;  %v86_v62 = vld [vmem:[%s3054_s2 + $0x28] sm:$0xff] }
 0x175   :  { %v719_v0 = vpop.xlane.xlu0 %718 }
 0x176   :  { %2528 = vpow2.f32 %v746_v63  ;;  %v739_v1 = vsub.f32 %v707_v36, %v719_v0 }
 0x178   :  { %v748_v3 = vmul.f32 1.442695, %v739_v1 }
 0x179   :  { %v728_v4 = vpop.xlane.xlu0 %727  ;;  %v722_v5 = vpop.xlane.xlu1 %721 }
 0x17a   :  { %2530 = vpow2.f32 %v748_v3  ;;  %v742_v6 = vsub.f32 %v710_v38, %v728_v4  ;;  %v740_v7 = vsub.f32 %v708_v43, %v722_v5  ;;  %v81_v38 = vld [vmem:[%s3054_s2] sm:$0xff]  ;;  %v88_v4 = vld [vmem:[%s3054_s2 + $0x38] sm:$0xff] }
 0x17b   :  { %2359 = vmatpush3.msra.mxu0 %v81_v38  ;;  %v1756_v38 = vld [vmem:[%s3059_s7 + $0x8] sm:$0xff] }
 0x17c   :  { %v750_v8 = vmul.f32 1.442695, %v740_v7  ;;  %v754_v9 = vmul.f32 1.442695, %v742_v6  ;;  %2368 = vmatprep.subr.mxu0 %v2600_v2  ;;  %v1386_v7 = vld [vmem:[%s3057_s5] sm:$0xff] }
 0x17d   :  { %v734_v10 = vpop.xlane.xlu0 %733  ;;  %v725_v11 = vpop.xlane.xlu1 %724 }
 0x17e   :  { %v744_v12 = vsub.f32 %v712_v45, %v734_v10  ;;  %v741_v13 = vsub.f32 %v709_v49, %v725_v11  ;;  %2532 = vpow2.f32 %v750_v8  ;;  %v83_v45 = vld [vmem:[%s3054_s2 + $0x10] sm:$0xff]  ;;  %v1387_v8 = vld [vmem:[%s3057_s5 + $0x8] sm:$0xff]  ;;  %v1389_v10 = vld [vmem:[%s3057_s5 + $0x18] sm:$0xff] }
 0x17f   :  { %2534 = vpow2.f32 %v754_v9  ;;  %v1388_v9 = vld [vmem:[%s3057_s5 + $0x10] sm:$0xff]  ;;  %v2892_v11 = vld [vmem:[%s3055_s3] sm:$0xff] }
 0x180   :  { %v2529_v14 = vpop.eup %2528  ;;  %v752_v15 = vmul.f32 1.442695, %v741_v13  ;;  %v758_v16 = vmul.f32 1.442695, %v744_v12  ;;  %v2897_v12 = vld [vmem:[%s3055_s3 + $0x8] sm:$0xff]  ;;  %v1738_v13 = vsel %vm1714_vm4, %v2892_v11, 0.0 }
 0x181   :  { %v731_v17 = vpop.xlane.xlu1 %730  ;;  %v762_v18 = vsel %vm91_vm0, %v2529_v14, 0.0 }
 0x182   :  { %v743_v19 = vsub.f32 %v711_v54, %v731_v17  ;;  %763 = vadd.xlane.f32.xlu0 %v762_v18  ;;  %2536 = vpow2.f32 %v752_v15 }
 0x183   :  { %2538 = vpow2.f32 %v758_v16  ;;  %v1739_v16 = vrot.slane %v1738_v13, 4 }
 0x184   :  { %v2531_v20 = vpop.eup %2530  ;;  %v756_v21 = vmul.f32 1.442695, %v743_v19 }
 0x185   :  { %v737_v22 = vpop.xlane.xlu1 %736  ;;  %v765_v23 = vsel %vm91_vm0, %v2531_v20, 0.0 }
 0x186   :  { %2540 = vpow2.f32 %v756_v21  ;;  %v745_v24 = vsub.f32 %v713_v58, %v737_v22  ;;  %766 = vadd.xlane.f32.xlu1 %v765_v23 }
 0x188   :  { %v760_v25 = vmul.f32 1.442695, %v745_v24  ;;  %v2533_v26 = vpop.eup %2532 }
 0x189   :  { %v768_v27 = vsel %vm91_vm0, %v2533_v26, 0.0  ;;  %v2535_v28 = vpop.eup %2534 }
 0x18a   :  { %2542 = vpow2.f32 %v760_v25  ;;  %769 = vadd.xlane.f32.xlu0 %v768_v27  ;;  %v774_v30 = vsel %vm91_vm0, %v2535_v28, 0.0 }
 0x18c   :  { %v2537_v29 = vpop.eup %2536 }
 0x18d   :  { %v771_v31 = vsel %vm91_vm0, %v2537_v29, 0.0  ;;  %v2812_v32 = vpop.eup %2538 }
 0x18e   :  { %775 = vadd.xlane.f32.xlu0 %v774_v30  ;;  %772 = vadd.xlane.f32.xlu1 %v771_v31  ;;  %v780_v35 = vsel %vm91_vm0, %v2812_v32, 0.0 }
 0x190   :  { %v2814_v33 = vpop.eup %2540 }
 0x191   :  { %v777_v34 = vsel %vm91_vm0, %v2814_v33, 0.0 }
 0x192   :  { %781 = vadd.xlane.f32.xlu0 %v780_v35  ;;  %778 = vadd.xlane.f32.xlu1 %v777_v34 }
 0x194   :  { %v2820_v36 = vpop.eup %2542 }
 0x195   :  { %v783_v37 = vsel %vm91_vm0, %v2820_v36, 0.0 }
 0x196   :  { %784 = vadd.xlane.f32.xlu1 %v783_v37  ;;  %v1755_v37 = vld [vmem:[%s3059_s7] sm:$0xff] }
 0x20f   :  { %v764_v40 = vpop.xlane.xlu0 %763 }
 0x210   :  { %2544 = vrcp.f32 %v764_v40 }
 0x213   :  { %v767_v41 = vpop.xlane.xlu1 %766 }
 0x214   :  { %2546 = vrcp.f32 %v767_v41 }
 0x217   :  { %v770_v42 = vpop.xlane.xlu0 %769 }
 0x218   :  { %2548 = vrcp.f32 %v770_v42  ;;  %v2476_v42 = vpack.c.bf16 %v1756_v38, %v1755_v37 }
 0x21a   :  { %v2545_v43 = vpop.eup %2544 }
 0x21b   :  { %v787_v44 = vmul.f32 %v2545_v43, %v2529_v14  ;;  %v776_v46 = vpop.xlane.xlu0 %775  ;;  %v773_v47 = vpop.xlane.xlu1 %772  ;;  %v1745_v14 = vsel %vm1714_vm4, %v2897_v12, 0.0 }
 0x21c   :  { %2550 = vrcp.f32 %v776_v46  ;;  %v1746_v17 = vrot.slane %v1745_v14, 4  ;;  %v1758_v46 = vld [vmem:[%s3059_s7 + $0x18] sm:$0xff] }
 0x21d   :  { %2361 = vmatmul.mubr.msk.f32.vlgmr.msra.gmra.mrb[4].mxu0 %vm91_vm0, %v787_v44  ;;  %2552 = vrcp.f32 %v773_v47 }
 0x21e   :  { %v2547_v48 = vpop.eup %2546  ;;  %2369 = vmatpush3.msra.mxu0 %v83_v45  ;;  %2370 = vmatprep.mubr.msk.f32.mxu0 %vm2601_vm1, %v2600_v2  ;;  %v1747_v21 = vadd.f32 %v1746_v17, %v1745_v14  ;;  %v1757_v45 = vld [vmem:[%s3059_s7 + $0x10] sm:$0xff] }
 0x21f   :  { %v789_v49 = vmul.f32 %v2547_v48, %v2531_v20  ;;  %2378 = vmatprep.subr.mxu0 %v2600_v2  ;;  %v782_v51 = vpop.xlane.xlu0 %781  ;;  %v779_v52 = vpop.xlane.xlu1 %778  ;;  %v1740_v20 = vadd.f32 %v1739_v16, %v1738_v13  ;;  %v2235_v13 = vld [vmem:[%s3060_s8] ss:$0 sm:$0xff]  ;;  %s2604_s8 = smov [#allocation2]  }
 0x220   :  { %2554 = vrcp.f32 %v782_v51  ;;  %v1748_v24 = vrot.slane %v1747_v21, 2 }
 0x221   :  { %2366 = vmatmul.mubr.msk.f32.vlgmr.msra.gmra.mrb[12].mxu1 %vm91_vm0, %v789_v49  ;;  %2556 = vrcp.f32 %v779_v52  ;;  %v1741_v23 = vrot.slane %v1740_v20, 2  ;;  %v2479_v49 = vpack.c.bf16 %v1758_v46, %v1757_v45 }
 0x222   :  { %2374 = vmatpush3.msra.mxu1 %v84_v50  ;;  %2375 = vmatprep.mubr.msk.f32.mxu1 %vm2601_vm1, %v2600_v2  ;;  %v2549_v53 = vpop.eup %2548 }
 0x223   :  { %2383 = vmatprep.subr.mxu1 %v2600_v2  ;;  %v791_v54 = vmul.f32 %v2549_v53, %v2533_v26  ;;  %v785_v55 = vpop.xlane.xlu1 %784  ;;  %v1742_v27 = vadd.f32 %v1741_v23, %v1740_v20  ;;  %v1852_v23 = vlaneseq }
 0x224   :  { %2558 = vrcp.f32 %v785_v55 }
 0x225   :  { %2371 = vmatmul.mubr.msk.f32.vlgmr.msra.gmra.mrb[6].mxu0 %vm91_vm0, %v791_v54 }
 0x226   :  { %v2551_v57 = vpop.eup %2550  ;;  %2379 = vmatpush3.msra.mxu0 %v85_v56  ;;  %2380 = vmatprep.mubr.msk.f32.mxu0 %vm2601_vm1, %v2600_v2 }
 0x227   :  { %v2553_v58 = vpop.eup %2552  ;;  %v795_v59 = vmul.f32 %v2551_v57, %v2535_v28  ;;  %2388 = vmatprep.subr.mxu0 %v2600_v2  ;;  %v1749_v28 = vadd.f32 %v1748_v24, %v1747_v21  ;;  %v2603_v21 = vmov 1966171168  }
 0x228   :  { %v793_v61 = vmul.f32 %v2553_v58, %v2537_v29 }
 0x229   :  { %2381 = vmatmul.mubr.msk.f32.vlgmr.msra.gmra.mrb[8].mxu0 %vm91_vm0, %v795_v59  ;;  %v1750_v34 = vrot.slane %v1749_v28, 1 }
 0x22a   :  { %v2555_v63 = vpop.eup %2554  ;;  %2376 = vmatmul.mubr.msk.f32.vlgmr.msra.gmra.mrb[14].mxu1 %vm91_vm0, %v793_v61  ;;  %2389 = vmatpush3.msra.mxu0 %v87_v60 }
 0x22b   :  { %v2557_v0 = vpop.eup %2556  ;;  %v799_v1 = vmul.f32 %v2555_v63, %v2812_v32  ;;  %2384 = vmatpush3.msra.mxu1 %v86_v62  ;;  %2385 = vmatprep.mubr.msk.f32.mxu1 %vm2601_vm1, %v2600_v2  ;;  %v1751_v44 = vadd.f32 %v1750_v34, %v1749_v28 }
 0x22c   :  { %v797_v3 = vmul.f32 %v2557_v0, %v2814_v33  ;;  %2390 = vmatprep.mubr.msk.f32.mxu0 %vm2601_vm1, %v2600_v2  ;;  %2393 = vmatprep.subr.mxu1 %v2600_v2  ;;  %v1743_v33 = vrot.slane %v1742_v27, 1 }
 0x22d   :  { %2391 = vmatmul.mubr.msk.f32.vlgmr.msra.gmra.mrb[10].mxu0 %vm91_vm0, %v799_v1  ;;  %2398 = vmatprep.subr.mxu0 %v1386_v7  ;;  %v1754_v51 = vmul.f32 0.125, %v1751_v44 }
 0x22e   :  { %v2559_v5 = vpop.eup %2558  ;;  %2386 = vmatmul.mubr.msk.f32.vlgmr.msra.gmra.mrb[16].mxu1 %vm91_vm0, %v797_v3  ;;  %2399 = vmatpush3.msra.mxu0 %v1386_v7  ;;  %v1744_v43 = vadd.f32 %v1743_v33, %v1742_v27 }
 0x22f   :  { %v801_v6 = vmul.f32 %v2559_v5, %v2820_v36  ;;  %2394 = vmatpush3.msra.mxu1 %v88_v4  ;;  %2395 = vmatprep.mubr.msk.f32.mxu1 %vm2601_vm1, %v2600_v2  ;;  %v2602_v36 = vmov 0.0|0.0  }
 0x230   :  { %2403 = vmatprep.subr.mxu1 %v1387_v8  ;;  %2408 = vmatprep.subr.mxu0 %v1388_v9  ;;  %v1753_v50 = vmul.f32 0.125, %v1744_v43 }
 0x232   :  { %2396 = vmatmul.mubr.msk.f32.vlgmr.msra.gmra.mrb[18].mxu1 %vm91_vm0, %v801_v6  ;;  %v1769_v52 = vsel %vm1768_vm5, %v1754_v51, %v1753_v50 }
 0x233   :  { %2404 = vmatpush3.msra.mxu1 %v1387_v8 }
 0x234   :  { %2413 = vmatprep.subr.mxu1 %v1389_v10 }
 0x2f0   :  { %v871_v15 = vpop.f32.mrb[4].mxu0 }
 0x2f1   :  { %v2362_v18 = vpop.f32.mrb[5].mxu0  ;;  %2400 = vmatprep.mubr.msk.f32.mxu0 %vm91_vm0, %v871_v15 }
 0x2f4   :  { %v944_v19 = vpop.f32.mrb[12].mxu1 }
 0x2f5   :  { %v2367_v22 = vpop.f32.mrb[13].mxu1  ;;  %2401 = vmatmul.mubr.msk.f32.vlgmr.msra.gmra.mrb[12].mxu0 %vm91_vm0, %v944_v19 }
 0x2f6   :  { %2409 = vmatpush3.msra.mxu0 %v1388_v9  ;;  %v1850_v22 = vunpack.c.l.s4 %v2603_v21  ;;  %v2046_v21 = vld [vmem:[%s3067_s15 + $0x30] sm:$0xff] }
 0x2f8   :  { %v1017_v25 = vpop.f32.mrb[6].mxu0  ;;  %v1851_v24 = vunpack.c.0.s8 %v1850_v22  ;;  %v2047_v22 = vld [vmem:[%s3067_s15 + $0x38] sm:$0xff] }
 0x2f9   :  { %v2372_v26 = vpop.f32.mrb[7].mxu0  ;;  %2405 = vmatprep.mubr.msk.f32.mxu1 %vm91_vm0, %v1017_v25  ;;  %v1853_v25 = vshrl.u32 %v1852_v23, 7  ;;  %v2501_v23 = vpack.c.bf16 %v2047_v22, %v2046_v21  ;;  %v2243_v21 = vld [vmem:[%s3063_s11] ss:$0 sm:$0xff] }
 0x2fb   :  { %v1854_v26 = vsub.s32 %v1851_v24, %v1853_v25  ;;  %v2048_v24 = vld [vmem:[%s3067_s15 + $0x40] sm:$0xff] }
 0x2fc   :  { %v1163_v29 = vpop.f32.mrb[8].mxu0 }
 0x2fd   :  { %v1090_v30 = vpop.f32.mrb[14].mxu1  ;;  %v2382_v31 = vpop.f32.mrb[9].mxu0  ;;  %2410 = vmatprep.mubr.msk.f32.mxu0 %vm91_vm0, %v1163_v29  ;;  %v1873_v29 = vsub.s32 0, %v1853_v25  ;;  %v2049_v25 = vld [vmem:[%s3067_s15 + $0x48] sm:$0xff] }
 0x2fe   :  { %v2377_v32 = vpop.f32.mrb[15].mxu1  ;;  %2406 = vmatmul.mubr.msk.f32.vlgmr.msra.gmra.mrb[20].mxu1 %vm91_vm0, %v1090_v30  ;;  %v2234_v30 = vld [vmem:[%s3058_s6] ss:$0 sm:$0xff]  ;;  %s2191_s6 = sshll.u32 %s2604_s8, 4  ;;  %s2192_s6 = int_to_ptr.vmem [resolvable:$true] %s2191_s6 }
 0x2ff   :  { %2414 = vmatpush3.msra.mxu1 %v1389_v10  ;;  %s2576_s20 = scalar_lea.vmem %s2192_s6, 256  ;;  %p2581_p1 = scmp.lt.s32.totalorder %s2192_s6, %s2192_s6 }
 0x300   :  { %v1309_v35 = vpop.f32.mrb[10].mxu0  ;;  %2475 = vmatprep.subr.bf16.mxu1 %v2602_v36  ;;  %p2577_p0 = scmp.ne.s32.totalorder %s2192_s6, %s2576_s20  ;;  %p2582_p2 = scmp.lt.s32.totalorder %s2576_s20, %s2576_s20 }
 0x301   :  { %v1236_v39 = vpop.f32.mrb[16].mxu1  ;;  %v2392_v40 = vpop.f32.mrb[11].mxu0  ;;  %2415 = vmatprep.mubr.msk.f32.mxu1 %vm91_vm0, %v1309_v35 }
 0x302   :  { %v2387_v41 = vpop.f32.mrb[17].mxu1  ;;  %2411 = vmatmul.mubr.msk.f32.vlgmr.msra.gmra.mrb[14].mxu0 %vm91_vm0, %v1236_v39  ;;  %p2583_p3 = por %p2582_p2, %p2581_p1 }
 0x304   :  { %p2584_p4 = pnand %p2583_p3, %p2577_p0 }
 0x305   :  { %v1382_v47 = vpop.f32.mrb[18].mxu1 }
 0x306   :  { %v2397_v48 = vpop.f32.mrb[19].mxu1  ;;  %2416 = vmatmul.mubr.msk.f32.vlgmr.msra.gmra.mrb[22].mxu1 %vm91_vm0, %v1382_v47 }
 0x307   :  { %2477 = vmatpush3.bf16.msra.mxu1 %v2476_v42  ;;  %2426 = vmatprep.mubr.msk.f32.mxu1 %vm2601_vm1, %v2600_v2 }
 0x308   :  { %2478 = vmatprep.subr.bf16.mxu1 %v2602_v36 }
 0x30b   :  { %2480 = vmatpush3.bf16.msra.mxu1 %v2479_v49 }
 0x30e   :  { %2427 = vmatmul.mubr.msk.f32.vlgmr.msra.gmra.mrb[24].mxu1 %vm1714_vm4, %v1769_v52 }
 0x3c8   :  { %v2402_v53 = vpop.f32.mrb[12].mxu0 }
 0x3c9   :  { %v1462_v54 = vpop.f32.mrb[13].mxu0  ;;  %v1722_v56 = vsel %vm1714_vm4, %v2402_v53, 0.0  ;;  %v1931_v53 = vld [vmem:[%s3065_s13 + $0x8] sm:$0xff] }
 0x3ca   :  { %v1715_v59 = vsel %vm1714_vm4, %v1462_v54, 0.0 }
 0x3d1   :  { %v2407_v55 = vpop.f32.mrb[20].mxu1 }
 0x3d2   :  { %v1723_v57 = vsel %vm1714_vm4, %v2407_v55, 0.0  ;;  %v1543_v58 = vpop.f32.mrb[21].mxu1  ;;  %v1932_v55 = vld [vmem:[%s3065_s13 + $0x10] sm:$0xff] }
 0x3d3   :  { %v1724_v60 = vadd.f32 %v1723_v57, %v1722_v56  ;;  %v1716_v2 = vsel %vm1714_vm4, %v1543_v58, 0.0  ;;  %v1933_v56 = vld [vmem:[%s3065_s13 + $0x18] sm:$0xff]  ;;  %v2040_v58 = vld [vmem:[%s3067_s15] sm:$0xff] }
 0x3d4   :  { %v1717_v61 = vadd.f32 %v1716_v2, %v1715_v59  ;;  %v2485_v57 = vpack.c.bf16 %v1933_v56, %v1932_v55  ;;  %v2041_v59 = vld [vmem:[%s3067_s15 + $0x8] sm:$0xff] }
 0x3d5   :  { %v2412_v62 = vpop.f32.mrb[14].mxu0 }
 0x3d6   :  { %v1725_v63 = vsel %vm1714_vm4, %v2412_v62, 0.0  ;;  %v1624_v0 = vpop.f32.mrb[15].mxu0 }
 0x3d7   :  { %v1726_v1 = vadd.f32 %v1725_v63, %v1724_v60  ;;  %v1718_v3 = vsel %vm1714_vm4, %v1624_v0, 0.0  ;;  %v2489_v60 = vpack.c.bf16 %v2041_v59, %v2040_v58 }
 0x3d8   :  { %v1719_v4 = vadd.f32 %v1718_v3, %v1717_v61 }
 0x3d9   :  { %v2417_v5 = vpop.f32.mrb[22].mxu1  ;;  %2490 = vmatprep.subr.bf16.mxu0 %v2489_v60 }
 0x3da   :  { %v1727_v6 = vsel %vm1714_vm4, %v2417_v5, 0.0  ;;  %v1705_v7 = vpop.f32.mrb[23].mxu1  ;;  %2492 = vmatpush3.bf16.msra.mxu0 %v2489_v60 }
 0x3db   :  { %v1728_v8 = vadd.f32 %v1727_v6, %v1726_v1  ;;  %v1720_v9 = vsel %vm1714_vm4, %v1705_v7, 0.0  ;;  %v2238_v7 = vld [vmem:[%s3062_s10] ss:$0 sm:$0xff] }
 0x3dc   :  { %v1721_v10 = vadd.f32 %v1720_v9, %v1719_v4  ;;  %v2237_v4 = vld [vmem:[%s3061_s9] ss:$0 sm:$0xff] }
 0x3dd   :  { %v1737_v36 = vadd.f32 %v2234_v30, %v1728_v8 }
 0x3de   :  { %v1736_v33 = vadd.f32 %v2234_v30, %v1721_v10 }
 0x3e1   :  { %v1838_v14 = vpop.f32.mrb[24].mxu1 }
 0x3e2   :  { %v1839_v15 = vadd.f32 %v2235_v13, %v1838_v14  ;;  %v2428_v16 = vpop.f32.mrb[25].mxu1 }
 0x3e3   :  { %v2043_v16 = vld [vmem:[%s3067_s15 + $0x18] sm:$0xff] }
 0x3e4   :  { %v1842_v17 = vsub.f32 0.0, %v1839_v15  ;;  %v2042_v15 = vld [vmem:[%s3067_s15 + $0x10] sm:$0xff] }
 0x3e6   :  { %v1843_v18 = vmul.f32 1.442695, %v1842_v17  ;;  %v2493_v17 = vpack.c.bf16 %v2043_v16, %v2042_v15 }
 0x3e8   :  { %2560 = vpow2.f32 %v1843_v18  ;;  %2494 = vmatprep.subr.bf16.mxu0 %v2493_v17  ;;  %v2044_v18 = vld [vmem:[%s3067_s15 + $0x20] sm:$0xff] }
 0x3e9   :  { %2496 = vmatpush3.bf16.msra.mxu0 %v2493_v17 }
 0x3f2   :  { %v2561_v19 = vpop.eup %2560 }
 0x3f3   :  { %v1845_v20 = vadd.f32 1.0, %v2561_v19  ;;  %v2045_v19 = vld [vmem:[%s3067_s15 + $0x28] sm:$0xff] }
 0x3f5   :  { %2562 = vrcp.f32 %v1845_v20  ;;  %v2497_v20 = vpack.c.bf16 %v2045_v19, %v2044_v18 }
 0x3f7   :  { %2498 = vmatprep.subr.bf16.mxu0 %v2497_v20 }
 0x3f8   :  { %2500 = vmatpush3.bf16.msra.mxu0 %v2497_v20 }
 0x3f9   :  { %2502 = vmatprep.subr.bf16.mxu0 %v2501_v23 }
 0x3fc   :  { %2504 = vmatpush3.bf16.msra.mxu0 %v2501_v23 }
 0x3ff   :  { %v2563_v27 = vpop.eup %2562 }
 0x400   :  { %v1855_v28 = vrot.slane %v2563_v27, %v1854_v26  ;;  %v2050_v27 = vld [vmem:[%s3067_s15 + $0x50] sm:$0xff] }
 0x402   :  { %v1863_v31 = vrot.slane %v1855_v28, %v1854_v26  ;;  %v1856_v32 = vcombine.high %v1855_v28, %v1855_v28  ;;  %v2051_v28 = vld [vmem:[%s3067_s15 + $0x58] sm:$0xff] }
 0x403   :  { %v2509_v30 = vpack.c.bf16 %v2051_v28, %v2050_v27 }
 0x404   :  { %v1874_v34 = vrot.slane %v1863_v31, %v1873_v29  ;;  %v1870_v35 = vrot.slane %v1856_v32, %v1854_v26  ;;  %v2505_v26 = vpack.c.bf16 %v2049_v25, %v2048_v24  ;;  %v2053_v31 = vld [vmem:[%s3067_s15 + $0x68] sm:$0xff]  ;;  %v2244_v25 = vld [vmem:[%s3064_s12] ss:$0 sm:$0xff] }
 0x406   :  { %v1881_v37 = vmul.f32 %v1874_v34, %v1736_v33  ;;  %v1878_v38 = vrot.slane %v1870_v35, %v1873_v29  ;;  %v2052_v29 = vld [vmem:[%s3067_s15 + $0x60] sm:$0xff]  ;;  %2506 = vmatprep.subr.bf16.mxu0 %v2505_v26  ;;  %v2054_v33 = vld [vmem:[%s3067_s15 + $0x70] sm:$0xff]  ;;  %v2055_v34 = vld [vmem:[%s3067_s15 + $0x78] sm:$0xff] }
 0x407   :  { %2508 = vmatpush3.bf16.msra.mxu0 %v2505_v26  ;;  %v2513_v32 = vpack.c.bf16 %v2053_v31, %v2052_v29  ;;  %v2517_v35 = vpack.c.bf16 %v2055_v34, %v2054_v33 }
 0x408   :  { %v1883_v39 = vadd.f32 %v1881_v37, %v2892_v11  ;;  %v1882_v40 = vmul.f32 %v1878_v38, %v1737_v36  ;;  %2510 = vmatprep.subr.bf16.mxu0 %v2509_v30  ;;  %v2239_v36 = vld [vmem:[%s3066_s14] ss:$0 sm:$0xff] }
 0x40a   :  { %v1887_v41 = vsel %vm1714_vm4, %v1883_v39, 0.0  ;;  %v1884_v42 = vadd.f32 %v1882_v40, %v2897_v12  ;;  %v1930_v12 = vld [vmem:[%s3065_s13] sm:$0xff] }
 0x40b   :  { %1888 = vadd.xlane.f32.xlu0 %v1887_v41  ;;  %v2481_v54 = vpack.c.bf16 %v1931_v53, %v1930_v12  ;;  %2512 = vmatpush3.bf16.msra.mxu0 %v2509_v30 }
 0x40c   :  { %v1890_v43 = vsel %vm1714_vm4, %v1884_v42, 0.0  ;;  %2514 = vmatprep.subr.bf16.mxu0 %v2513_v32 }
 0x40d   :  { %1891 = vadd.xlane.f32.xlu1 %v1890_v43  ;;  %2482 = vmatprep.subr.bf16.mxu1 %v2481_v54 }
 0x40e   :  { %2484 = vmatpush3.bf16.msra.mxu1 %v2481_v54 }
 0x40f   :  { %2486 = vmatprep.subr.bf16.mxu1 %v2485_v57  ;;  %2516 = vmatpush3.bf16.msra.mxu0 %v2513_v32 }
 0x410   :  { %2518 = vmatprep.subr.bf16.mxu0 %v2517_v35 }
 0x412   :  { %2488 = vmatpush3.bf16.msra.mxu1 %v2485_v57  ;;  %v2242_v57 = vld [vmem:[%s3068_s16] ss:$0 sm:$0xff] }
 0x413   :  { %2520 = vmatpush3.bf16.msra.mxu0 %v2517_v35 }
 0x498   :  { %v1889_v44 = vpop.xlane.xlu0 %1888 }
 0x499   :  { %v1894_v45 = vmul.f32 0.03125, %v1889_v44 }
 0x49a   :  { %v1892_v46 = vpop.xlane.xlu1 %1891 }
 0x49b   :  { %v1896_v47 = vsub.f32 %v1883_v39, %v1894_v45  ;;  %v1895_v48 = vmul.f32 0.03125, %v1892_v46 }
 0x49d   :  { %v1897_v49 = vsub.f32 %v1884_v42, %v1895_v48  ;;  %v1898_v50 = vmul.f32 %v1896_v47, %v1896_v47 }
 0x49f   :  { %v1900_v51 = vsel %vm1714_vm4, %v1898_v50, 0.0  ;;  %v1899_v52 = vmul.f32 %v1897_v49, %v1897_v49 }
 0x4a0   :  { %1901 = vadd.xlane.f32.xlu0 %v1900_v51 }
 0x4a1   :  { %v1903_v11 = vsel %vm1714_vm4, %v1899_v52, 0.0 }
 0x4a2   :  { %1904 = vadd.xlane.f32.xlu1 %v1903_v11 }
 0x52d   :  { %v1902_v2 = vpop.xlane.xlu0 %1901 }
 0x52e   :  { %v1906_v61 = vmul.f32 0.03125, %v1902_v2 }
 0x52f   :  { %v1905_v62 = vpop.xlane.xlu1 %1904 }
 0x530   :  { %v1908_v63 = vadd.f32 1e-05, %v1906_v61  ;;  %v1907_v0 = vmul.f32 0.03125, %v1905_v62 }
 0x532   :  { %2564 = vrsqrt.f32 %v1908_v63  ;;  %v1909_v1 = vadd.f32 1e-05, %v1907_v0 }
 0x534   :  { %2566 = vrsqrt.f32 %v1909_v1 }
 0x53c   :  { %v2565_v3 = vpop.eup %2564 }
 0x53d   :  { %v1912_v5 = vmul.f32 %v2565_v3, %v1896_v47 }
 0x53e   :  { %v2567_v6 = vpop.eup %2566 }
 0x53f   :  { %v1913_v8 = vmul.f32 %v2567_v6, %v1897_v49  ;;  %v1920_v9 = vmul.f32 %v2237_v4, %v1912_v5 }
 0x541   :  { %v1921_v10 = vmul.f32 %v2237_v4, %v1913_v8  ;;  %v2970_v13 = vadd.f32 %v2238_v7, %v1920_v9 }
 0x543   :  { %v2972_v14 = vadd.f32 %v2238_v7, %v1921_v10  ;;  %2437 = vmatprep.mubr.msk.f32.mxu1 %vm1714_vm4, %v2970_v13 }
 0x545   :  { %2438 = vmatmul.mubr.msk.f32.vlgmr.msra.gmra.mrb[26].mxu1 %vm1714_vm4, %v2972_v14 }
 0x618   :  { %v2439_v37 = vpop.f32.mrb[26].mxu1 }
 0x619   :  { %v2019_v38 = vadd.f32 %v2439_v37, %v2239_v36  ;;  %v2013_v39 = vpop.f32.mrb[27].mxu1 }
 0x61a   :  { %v2014_v40 = vadd.f32 %v2239_v36, %v2013_v39 }
 0x61b   :  { %v2025_v41 = vmul.f32 %v2019_v38, %v2019_v38  ;;  %v2023_v54 = vmul.f32 0.5, %v2019_v38 }
 0x61c   :  { %v2024_v42 = vmul.f32 %v2014_v40, %v2014_v40  ;;  %v2022_v12 = vmul.f32 0.5, %v2014_v40 }
 0x61d   :  { %v2027_v43 = vmul.f32 %v2025_v41, %v2019_v38 }
 0x61e   :  { %v2026_v44 = vmul.f32 %v2024_v42, %v2014_v40 }
 0x61f   :  { %v2029_v45 = vmul.f32 0.044715, %v2027_v43 }
 0x620   :  { %v2028_v46 = vmul.f32 0.044715, %v2026_v44 }
 0x621   :  { %v2031_v47 = vadd.f32 %v2029_v45, %v2019_v38 }
 0x622   :  { %v2030_v48 = vadd.f32 %v2028_v46, %v2014_v40 }
 0x623   :  { %v2033_v49 = vmul.f32 0.7978846, %v2031_v47 }
 0x624   :  { %v2032_v50 = vmul.f32 0.7978846, %v2030_v48 }
 0x625   :  { %2568 = vtanh.f32 %v2033_v49 }
 0x626   :  { %2570 = vtanh.f32 %v2032_v50 }
 0x62f   :  { %v2569_v51 = vpop.eup %2568 }
 0x630   :  { %v2571_v52 = vpop.eup %2570  ;;  %v2037_v11 = vadd.f32 1.0, %v2569_v51 }
 0x631   :  { %v2036_v53 = vadd.f32 1.0, %v2571_v52 }
 0x632   :  { %v2039_v56 = vmul.f32 %v2037_v11, %v2023_v54 }
 0x633   :  { %v2038_v55 = vmul.f32 %v2036_v53, %v2022_v12 }
 0x635   :  { %2472 = vmatprep.mubr.f32.mxu0 %v2038_v55 }
 0x636   :  { %2473 = vmatmul.mubr.f32.vlgmr.msra.gmra.mrb[16].mxu0 %v2039_v56 }
 0x709   :  { %v2474_v58 = vpop.f32.mrb[16].mxu0 }
 0x70a   :  { %v2135_v59 = vadd.f32 %v2474_v58, %v2242_v57  ;;  %v2129_v60 = vpop.f32.mrb[17].mxu0 }
 0x70b   :  { %v2130_v2 = vadd.f32 %v2242_v57, %v2129_v60 }
 0x70c   :  { %v2139_v61 = vadd.f32 %v2135_v59, %v2972_v14 }
 0x70d   :  { %v2138_v62 = vadd.f32 %v2130_v2, %v2970_v13 }
 0x70e   :  { %v2145_v63 = vsel %vm1714_vm4, %v2139_v61, 0.0 }
 0x70f   :  { %2146 = vadd.xlane.f32.xlu1 %v2145_v63  ;;  %v2142_v0 = vsel %vm1714_vm4, %v2138_v62, 0.0 }
 0x710   :  { %2143 = vadd.xlane.f32.xlu0 %v2142_v0 }
 0x79c   :  { %v2147_v1 = vpop.xlane.xlu1 %2146 }
 0x79d   :  { %v2149_v3 = vmul.f32 0.03125, %v2147_v1  ;;  %v2144_v4 = vpop.xlane.xlu0 %2143 }
 0x79e   :  { %v2148_v5 = vmul.f32 0.03125, %v2144_v4 }
 0x79f   :  { %v2151_v6 = vsub.f32 %v2139_v61, %v2149_v3 }
 0x7a0   :  { %v2150_v7 = vsub.f32 %v2138_v62, %v2148_v5 }
 0x7a1   :  { %v2153_v8 = vmul.f32 %v2151_v6, %v2151_v6 }
 0x7a2   :  { %v2152_v9 = vmul.f32 %v2150_v7, %v2150_v7 }
 0x7a3   :  { %v2157_v10 = vsel %vm1714_vm4, %v2153_v8, 0.0 }
 0x7a4   :  { %2158 = vadd.xlane.f32.xlu1 %v2157_v10  ;;  %v2154_v14 = vsel %vm1714_vm4, %v2152_v9, 0.0 }
 0x7a5   :  { %2155 = vadd.xlane.f32.xlu0 %v2154_v14 }
 0x831   :  { %v2159_v13 = vpop.xlane.xlu1 %2158 }
 0x832   :  { %v2161_v15 = vmul.f32 0.03125, %v2159_v13  ;;  %v2156_v16 = vpop.xlane.xlu0 %2155 }
 0x833   :  { %v2160_v17 = vmul.f32 0.03125, %v2156_v16 }
 0x834   :  { %v2163_v18 = vadd.f32 1e-05, %v2161_v15 }
 0x835   :  { %v2162_v19 = vadd.f32 1e-05, %v2160_v17 }
 0x836   :  { %2572 = vrsqrt.f32 %v2163_v18 }
 0x837   :  { %2574 = vrsqrt.f32 %v2162_v19 }
 0x840   :  { %v2573_v20 = vpop.eup %2572 }
 0x841   :  { %v2575_v22 = vpop.eup %2574  ;;  %v2167_v23 = vmul.f32 %v2573_v20, %v2151_v6 }
 0x842   :  { %v2166_v24 = vmul.f32 %v2575_v22, %v2150_v7 }
 0x843   :  { %v2175_v26 = vmul.f32 %v2243_v21, %v2167_v23 }
 0x844   :  { %v2174_v27 = vmul.f32 %v2243_v21, %v2166_v24 }
 0x845   :  { %v2183_v28 = vadd.f32 %v2244_v25, %v2175_v26 }
 0x846   :  { %v2182_v29 = vadd.f32 %v2244_v25, %v2174_v27 }
 0x847   :  { %2185 = vst.msk [vmem:[#allocation2 + $0x8] sm:$0xff] %vm1714_vm4, %v2183_v28 }
 0x848   :  { %2184 = vst.msk [vmem:[#allocation2] sm:$0xff] %vm1714_vm4, %v2182_v29 }
 0x849   :  { %2587 = shalt.err (!%p2584_p4)
}
 0x84a   :  { %s2588_s21 = scalar_lea.hbm %s3069_s17, 256 }
 0x84b   :  { %p2589_p5 = scmp.ne.s32.totalorder %s3069_s17, %s2588_s21  ;;  %p2592_p6 = scmp.lt.u32.totalorder %s2588_s21, %s3069_s17 }
 0x84d   :  { %p2594_p7 = pnand %p2592_p6, %p2589_p5 }
 0x84f   :  { %2597 = shalt.err (!%p2594_p7)
}
 0x850   :  { %s2605_s27 = smov 128   ;;  %s2606_s28 = smov 8  }
 0x851   :  { %2197 = dma.vmem_to_hbm [thread:$0]  %s2192_s6, 256, %s3069_s17, [#allocation3], %s2605_s27, %s2605_s27, %s2606_s28  }
 0x852   :  { %2598 = dma.done.wait [#allocation3], 256  }
 0x853   :  { %2599 = vsyncadd [#allocation3], 4294967040 }
 0x854   :  { %2201 = vsyncpa [#allocation3], 1 }

</bundles_post_ra>
